<compile_context>
chip_gen: v6e
topology: v6e:2x2x1
jax: 0.10.0
libtpu: 0.0.40
codegen_flags: <defaults>
</compile_context>

<pallas_src>
import functools

import jax
import jax.numpy as jnp
from jax.experimental import pallas as pl
from jax.experimental.pallas import tpu as pltpu

_LANES = 128
_SUBLANES = 8


def _scale_kernel(x_ref, o_ref, *, fn, scale, compute_dtype):
    # Kernel is HBM-bound; the fn + scale multiply ride in VPU/EUP slack.
    x = x_ref[...].astype(compute_dtype)
    o_ref[...] = (fn(x) * jnp.asarray(scale, compute_dtype)).astype(o_ref.dtype)


def _vmem_capacity_bytes():
    try:
        return int(pltpu.get_tpu_info().vmem_capacity_bytes)
    except Exception:
        return 64 << 20  # conservative default = v7x per-TensorCore VMEM


def _pick_block_rows(rows, itemsize):
    """Byte-targeted, generation-gated, dtype-packed block rows."""
    vmem_cap = _vmem_capacity_bytes()
    # v5e/v6e (128 MiB VMEM): 8 MiB blocks; v7x (64 MiB/TC): 4 MiB blocks so
    # that 2 input + 2 output double-buffers stay well inside the budget.
    block_bytes = (8 << 20) if vmem_cap >= (96 << 20) else (4 << 20)
    packing = _SUBLANES * max(1, 4 // itemsize)  # 8 f32, 16 bf16, 32 int8/fp8
    max_br = max(packing, (block_bytes // (_LANES * itemsize)) // packing * packing)
    if rows <= max_br:
        # Single block equal to the full array dims (always layout-legal).
        return rows, 1
    return max_br, pl.cdiv(rows, max_br)


def _scale_2d(x2d, *, fn, scale, compute_dtype):
    rows, lanes = x2d.shape
    itemsize = jnp.dtype(x2d.dtype).itemsize
    br, num_blocks = _pick_block_rows(rows, itemsize)
    # Double-buffered in + out working set, plus slack for scratch/regalloc.
    vmem_limit = max(32 << 20, 4 * br * lanes * itemsize + (8 << 20))

    kernel = functools.partial(
        _scale_kernel, fn=fn, scale=scale, compute_dtype=compute_dtype
    )
    return pl.pallas_call(
        kernel,
        out_shape=jax.ShapeDtypeStruct((rows, lanes), x2d.dtype),
        grid_spec=pl.GridSpec(
            grid=(num_blocks,),
            in_specs=[pl.BlockSpec((br, lanes), lambda i: (i, 0))],
            out_specs=pl.BlockSpec((br, lanes), lambda i: (i, 0)),
        ),
        compiler_params=pltpu.CompilerParams(
            dimension_semantics=("parallel",),
            vmem_limit_bytes=vmem_limit,
        ),
        cost_estimate=pl.CostEstimate(
            flops=8 * rows * lanes,           # gelu poly + scale mul (rough)
            transcendentals=rows * lanes,     # one tanh/erf per element
            bytes_accessed=2 * rows * lanes * itemsize,
        ),
    )(x2d)


def scale_forward(x, *, fn, scale, compute_dtype=jnp.float32):
    """Pallas implementation of Scale(scale, fn).forward(x).

    `fn` must be elementwise (tile-local and shape-agnostic) since the input
    is streamed through the kernel as a lane-dense (rows, 128) view.
    # TODO(synk): fns with cross-element dependencies (attention, convs, full
    # feed-forward blocks) need shape-aware BlockSpecs / matmul pipelines
    # rather than this generic elementwise fusion.
    """
    orig_shape = x.shape
    n = x.size
    if n == 0:
        return x

    flat = x.reshape(-1)                 # free (contiguous) metadata op
    main_n = (n // _LANES) * _LANES
    tail_n = n - main_n

    pieces = []
    if main_n:
        main = flat if tail_n == 0 else flat[:main_n]
        x2d = main.reshape(main_n // _LANES, _LANES)   # free bitcast
        out2d = _scale_2d(x2d, fn=fn, scale=scale, compute_dtype=compute_dtype)
        pieces.append(out2d.reshape(main_n))
    if tail_n:
        # TODO(synk): rare ragged tail (< 128 elements); computed with plain
        # jnp to avoid a full-array pad + slice (2x HBM traffic) on the
        # kernel path.
        tail = flat[main_n:].astype(compute_dtype)
        pieces.append((fn(tail) * jnp.asarray(scale, compute_dtype)).astype(x.dtype))

    out_flat = pieces[0] if len(pieces) == 1 else jnp.concatenate(pieces)
    return out_flat.reshape(orig_shape)


if __name__ == "__main__":
    key = jax.random.PRNGKey(0)
    B, T, D = 2, 8, 32
    x = jax.random.normal(key, (B, T, D), dtype=jnp.float32)

    scale = 0.5
    # jax.nn.gelu defaults to the tanh approximation; pass approximate=False
    # for exact torch.nn.GELU (erf) parity if the wrapped torch fn uses it.
    fn = jax.nn.gelu

    out = jax.block_until_ready(scale_forward(x, fn=fn, scale=scale))
    ref = fn(x) * scale
    assert out.shape == ref.shape and out.dtype == ref.dtype
    assert jnp.allclose(out, ref, atol=1e-5, rtol=1e-5)

    # Ragged-tail path (n % 128 != 0): main part through the kernel, tail in jnp.
    x2 = jax.random.normal(jax.random.PRNGKey(1), (2, 9, 50), dtype=jnp.float32)
    out2 = jax.block_until_ready(scale_forward(x2, fn=fn, scale=scale))
    ref2 = fn(x2) * scale
    assert jnp.allclose(out2, ref2, atol=1e-5, rtol=1e-5)

    print("KERNEL_OK")
</pallas_src>

<mosaic_0001>
module attributes {stable_mosaic.version = 11 : i64} {
  func.func @_scale_kernel(%arg0: i32, %arg1: memref<4x128xf32, #tpu.memory_space<vmem>>, %arg2: memref<4x128xf32, #tpu.memory_space<vmem>>) attributes {dimension_semantics = [#tpu.dimension_semantics<parallel>], iteration_bounds = array<i64: 1>, scalar_prefetch = 0 : i64, scratch_operands = 0 : i64, tpu.core_type = #tpu.core_type<tc>, window_params = [{transform_indices = @transform_0, window_bounds = array<i64: 4, 128>}, {transform_indices = @transform_1, window_bounds = array<i64: 4, 128>}]} {
    %c0 = arith.constant 0 : index
    %c0_0 = arith.constant 0 : index
    %0 = vector.load %arg1[%c0, %c0_0] : memref<4x128xf32, #tpu.memory_space<vmem>>, vector<4x128xf32>
    %1 = arith.mulf %0, %0 : vector<4x128xf32>
    %2 = arith.mulf %0, %1 : vector<4x128xf32>
    %cst = arith.constant 4.471500e-02 : f32
    %3 = vector.broadcast %cst : f32 to vector<4x128xf32>
    %4 = arith.mulf %3, %2 : vector<4x128xf32>
    %5 = arith.addf %0, %4 : vector<4x128xf32>
    %cst_1 = arith.constant 0.797884583 : f32
    %6 = vector.broadcast %cst_1 : f32 to vector<4x128xf32>
    %7 = arith.mulf %6, %5 : vector<4x128xf32>
    %8 = math.tanh %7 : vector<4x128xf32>
    %cst_2 = arith.constant 1.000000e+00 : f32
    %9 = vector.broadcast %cst_2 : f32 to vector<4x128xf32>
    %10 = arith.addf %9, %8 : vector<4x128xf32>
    %cst_3 = arith.constant 5.000000e-01 : f32
    %11 = vector.broadcast %cst_3 : f32 to vector<4x128xf32>
    %12 = arith.mulf %11, %10 : vector<4x128xf32>
    %13 = arith.mulf %0, %12 : vector<4x128xf32>
    %cst_4 = arith.constant 5.000000e-01 : f32
    %14 = vector.broadcast %cst_4 : f32 to vector<4x128xf32>
    %15 = arith.mulf %13, %14 : vector<4x128xf32>
    %c0_5 = arith.constant 0 : index
    %c0_6 = arith.constant 0 : index
    %16 = vector.load %arg2[%c0_5, %c0_6] : memref<4x128xf32, #tpu.memory_space<vmem>>, vector<4x128xf32>
    tpu.vector_store %arg2[%c0_5, %c0_6], %15 {strides = array<i32>} : memref<4x128xf32, #tpu.memory_space<vmem>>, vector<4x128xf32>,
    return
  }
  func.func @transform_0(%arg0: i32) -> (i32, i32) {
    %c0_i32 = arith.constant 0 : i32
    %c0_i32_0 = arith.constant 0 : i32
    return %arg0, %c0_i32 : i32, i32
  }
  func.func @transform_1(%arg0: i32) -> (i32, i32) {
    %c0_i32 = arith.constant 0 : i32
    %c0_i32_0 = arith.constant 0 : i32
    return %arg0, %c0_i32 : i32, i32
  }
}

</mosaic_0001>

<bundles_post_ra>
// kernel: tpu_custom_call.1
= control target key start
LH: loop header
LB: loop body
LE: loop exit
PB: predicated region body
PF: predicated region fallthrough
CT: control target
= control target key end

     0   :  { %6 = vsyncpa [#allocation3], 0  ;;  %s114_s0 = inlined_call_operand.hbm [shape: f32[4,128], index: 0, kind: input, shape index: {}]   ;;  %s115_s1 = inlined_call_operand.hbm [shape: f32[4,128], index: 1, kind: output, shape index: {}]  }
   0x1   :  { %7 = vsyncpa [#allocation4], 0  ;;  %s96_s6 = smov [#allocation2]  }
   0x2   :  { %s14_s7 = sshll.u32 %s96_s6, 4  ;;  %s15_s7 = int_to_ptr.vmem [resolvable:$true] %s14_s7 }
   0x3   :  { %s60_s8 = scalar_lea.vmem %s15_s7, 64  ;;  %p65_p1 = scmp.lt.s32.totalorder %s15_s7, %s15_s7 }
   0x4   :  { %p61_p0 = scmp.ne.s32.totalorder %s15_s7, %s60_s8  ;;  %p66_p2 = scmp.lt.s32.totalorder %s60_s8, %s60_s8 }
   0x6   :  { %p67_p3 = por %p66_p2, %p65_p1 }
   0x8   :  { %p68_p4 = pnand %p67_p3, %p61_p0 }
   0xa   :  { %71 = shalt.err (!%p68_p4)
}
   0xb   :  { %17 = dma.hbm_to_vmem [thread:$0]  %s114_s0, 64, %s15_s7, [#allocation3]  }
   0xc   :  { %92 = dma.done.wait [#allocation3], 64  }
   0xd   :  { %93 = vsyncadd [#allocation3], 4294967232  ;;  %v21_v0 = vld [vmem:[#allocation2] sm:$0xf]  ;;  %s97_s11 = smov [#allocation5]  }
   0xe   :  { %v22_v1 = vmul.f32 %v21_v0, %v21_v0  ;;  %s39_s12 = sshll.u32 %s97_s11, 4  ;;  %s40_s12 = int_to_ptr.vmem [resolvable:$true] %s39_s12 }
   0xf   :  { %s72_s13 = scalar_lea.vmem %s40_s12, 64  ;;  %p77_p6 = scmp.lt.s32.totalorder %s40_s12, %s40_s12 }
  0x10   :  { %v23_v2 = vmul.f32 %v22_v1, %v21_v0  ;;  %p73_p5 = scmp.ne.s32.totalorder %s40_s12, %s72_s13  ;;  %p78_p7 = scmp.lt.s32.totalorder %s72_s13, %s72_s13 }
  0x12   :  { %v24_v3 = vmul.f32 0.044715, %v23_v2  ;;  %p79_p8 = por %p78_p7, %p77_p6 }
  0x14   :  { %v25_v4 = vadd.f32 %v24_v3, %v21_v0  ;;  %p80_p9 = pnand %p79_p8, %p73_p5 }
  0x16   :  { %v26_v5 = vmul.f32 0.7978846, %v25_v4 }
  0x18   :  { %50 = vtanh.f32 %v26_v5 }
  0x25   :  { %v51_v6 = vpop.eup %50 }
  0x26   :  { %v28_v7 = vadd.f32 1.0, %v51_v6 }
  0x28   :  { %v29_v8 = vmul.f32 0.5, %v28_v7 }
  0x2a   :  { %v30_v9 = vmul.f32 %v29_v8, %v21_v0 }
  0x2c   :  { %v31_v10 = vmul.f32 0.5, %v30_v9 }
  0x2e   :  { %32 = vst [vmem:[#allocation5] sm:$0xf] %v31_v10 }
  0x2f   :  { %83 = shalt.err (!%p80_p9)
}
  0x30   :  { %42 = dma.vmem_to_hbm [thread:$0]  %s40_s12, 64, %s115_s1, [#allocation4]  }
  0x31   :  { %94 = dma.done.wait [#allocation4], 64  }
  0x32   :  { %95 = vsyncadd [#allocation4], 4294967232 }
  0x33   :  { %46 = vsyncpa [#allocation3], 1 }
  0x34   :  { %47 = vsyncpa [#allocation4], 1 }

</bundles_post_ra>
